<compile_context>
chip_gen: v6e
topology: v6e:2x2x1
jax: 0.10.0
libtpu: 0.0.40
codegen_flags: <defaults>
</compile_context>

<pallas_src>
import jax
import jax.numpy as jnp
from jax import lax
from jax.experimental import pallas as pl
from jax.experimental.pallas import tpu as pltpu

_SUBCHUNK = 128          # rows per in-kernel sub-chunk (controls vreg pressure)
_SINGLE_STEP_MAX = 1024  # up to this batch size, run a single grid step


def _round_up(x, m):
    return ((x + m - 1) // m) * m


def _actor_mlp_kernel(ma_ref, x_ref, w1_ref, b1_ref, w2_ref, b2_ref,
                      w3_ref, b3_ref, out_ref):
    tile = x_ref.shape[0]          # static (block shape)
    out_dim = out_ref.shape[-1]    # static (unpadded action dim)
    tc = min(_SUBCHUNK, tile)
    full_chunks = tile // tc
    rem = tile - full_chunks * tc

    max_action = ma_ref[0, 0]      # SMEM scalar

    # Weights/biases are small and VMEM-resident; read once per grid step.
    w1 = w1_ref[...]
    b1 = b1_ref[...]
    w2 = w2_ref[...]
    b2 = b2_ref[...]
    w3 = w3_ref[...]
    b3 = b3_ref[...]

    def do_chunk(row0, rows):
        # bf16 MXU operands, f32 accumulate; bias/ReLU/tanh in f32.
        x = x_ref[pl.ds(row0, rows), :].astype(jnp.bfloat16)
        h1 = jnp.dot(x, w1, preferred_element_type=jnp.float32)
        h1 = jnp.maximum(h1 + b1, 0.0).astype(jnp.bfloat16)
        h2 = jnp.dot(h1, w2, preferred_element_type=jnp.float32)
        h2 = jnp.maximum(h2 + b2, 0.0).astype(jnp.bfloat16)
        z = jnp.dot(h2, w3, preferred_element_type=jnp.float32) + b3
        mu = jnp.tanh(z) * max_action
        # Store only the real action columns (lean HBM writeback).
        out_ref[pl.ds(row0, rows), :] = mu[:, :out_dim].astype(out_ref.dtype)

    if full_chunks == 1:
        do_chunk(0, tc)
    elif full_chunks > 1:
        def body(c, carry):
            do_chunk(pl.multiple_of(c * tc, tc), tc)
            return carry
        lax.fori_loop(0, full_chunks, body, 0, unroll=True)
    if rem > 0:
        do_chunk(full_chunks * tc, rem)


def init_params(key, input_dim, output_dim, hidden):
    """Deterministic synthetic init (PyTorch-Linear-like uniform fan-in bounds).

    Weights are stored pre-transposed as (in, out); biases as (1, out); f32.
    """
    dims = [input_dim] + list(hidden) + [output_dim]
    params = {}
    for i, (fan_in, fan_out) in enumerate(zip(dims[:-1], dims[1:]), start=1):
        key, kw, kb = jax.random.split(key, 3)
        bound = 1.0 / jnp.sqrt(jnp.float32(fan_in))
        params[f"w{i}"] = jax.random.uniform(
            kw, (fan_in, fan_out), jnp.float32, -bound, bound)
        params[f"b{i}"] = jax.random.uniform(
            kb, (1, fan_out), jnp.float32, -bound, bound)
    return params


def prepare_params(params, *, lane=128):
    """One-time conversion to kernel layout.

    bf16 weights (MXU operands), f32 biases, and the output layer padded to a
    lane-dense multiple of 128 columns.  Padding happens here (once), not per
    forward call; the padded columns never reach HBM (kernel stores only
    out_dim columns).  Returns (kernel_params, out_dim).
    """
    out_dim = params["w3"].shape[1]
    out_pad = _round_up(out_dim, lane)
    w3, b3 = params["w3"], params["b3"]
    if out_pad != out_dim:
        w3 = jnp.zeros((w3.shape[0], out_pad), w3.dtype).at[:, :out_dim].set(w3)
        b3 = jnp.zeros((1, out_pad), b3.dtype).at[:, :out_dim].set(b3)
    kparams = {
        "w1": params["w1"].astype(jnp.bfloat16),
        "b1": params["b1"].astype(jnp.float32),
        "w2": params["w2"].astype(jnp.bfloat16),
        "b2": params["b2"].astype(jnp.float32),
        "w3": w3.astype(jnp.bfloat16),
        "b3": b3.astype(jnp.float32),
    }
    return kparams, out_dim


def actor_forward(state, kparams, max_action, out_dim, *, tb=512,
                  core_parallel=False):
    """TD3 actor forward: tanh(MLP(state)) * max_action.

    state:    (B, input_dim) f32.
    kparams:  output of prepare_params (bf16 weights, padded output layer).
    out_dim:  unpadded action dimension.
    tb:       batch tile for B > 1024 (multiple of 8; multiple of 128 ideal).
    core_parallel: set True on v7x with >= 2 batch tiles to shard across TCs.
    """
    assert tb % 8 == 0
    w1, b1 = kparams["w1"], kparams["b1"]
    w2, b2 = kparams["w2"], kparams["b2"]
    w3, b3 = kparams["w3"], kparams["b3"]

    B, in_dim = state.shape
    h1_dim, h2_dim, out_pad = w1.shape[1], w2.shape[1], w3.shape[1]

    # One grid step for small/medium batches; tile only when it pays off.
    tile = B if B <= _SINGLE_STEP_MAX else tb
    grid_n = pl.cdiv(B, tile)

    ma = jnp.asarray(max_action, jnp.float32).reshape(1, 1)

    # Weights/biases: same block every grid step -> VMEM-resident, no re-DMA.
    # (pipeline_mode=pl.Buffered(1) would shave the unused second buffer; the
    #  arrays are ~135 KB total so it is left at the default for robustness.)
    resident = lambda arr: pl.BlockSpec(arr.shape, lambda i: (0, 0))

    flops = 2 * B * (in_dim * h1_dim + h1_dim * h2_dim + h2_dim * out_pad)
    bytes_accessed = (
        B * in_dim * state.dtype.itemsize
        + sum(int(a.size) * a.dtype.itemsize for a in (w1, b1, w2, b2, w3, b3))
        + B * out_dim * 4)

    out = pl.pallas_call(
        _actor_mlp_kernel,
        out_shape=jax.ShapeDtypeStruct((B, out_dim), jnp.float32),
        grid_spec=pl.GridSpec(
            grid=(grid_n,),
            in_specs=[
                pl.BlockSpec(memory_space=pltpu.MemorySpace.SMEM),   # max_action
                pl.BlockSpec((tile, in_dim), lambda i: (i, 0)),      # state tile
                resident(w1), resident(b1),
                resident(w2), resident(b2),
                resident(w3), resident(b3),
            ],
            out_specs=pl.BlockSpec((tile, out_dim), lambda i: (i, 0)),
        ),
        compiler_params=pltpu.CompilerParams(
            dimension_semantics=(
                (pltpu.CORE_PARALLEL,) if core_parallel else ("arbitrary",)),
        ),
        cost_estimate=pl.CostEstimate(
            flops=flops,
            transcendentals=B * out_pad,
            bytes_accessed=bytes_accessed),
    )(ma, state, w1, b1, w2, b2, w3, b3)

    return out


# ----------------------------- references -----------------------------------

def actor_forward_ref_f32(state, params, max_action):
    h = jnp.maximum(state @ params["w1"] + params["b1"], 0.0)
    h = jnp.maximum(h @ params["w2"] + params["b2"], 0.0)
    return jnp.tanh(h @ params["w3"] + params["b3"]) * max_action


def actor_forward_ref_bf16(state, params, max_action):
    """Reference emulating the kernel's numerics (bf16 operands, f32 accum)."""
    def mm(a, w):
        return jnp.dot(a.astype(jnp.bfloat16), w.astype(jnp.bfloat16),
                       preferred_element_type=jnp.float32)
    h = jnp.maximum(mm(state, params["w1"]) + params["b1"], 0.0)
    h = jnp.maximum(mm(h, params["w2"]) + params["b2"], 0.0)
    return jnp.tanh(mm(h, params["w3"]) + params["b3"]) * max_action


if __name__ == "__main__":
    key = jax.random.PRNGKey(0)

    batch = 8
    input_dim = 16     # flat state vector
    output_dim = 8     # action dimension
    hidden = [128, 128]
    max_action = 2.0

    key, kp, kx = jax.random.split(key, 3)
    params = init_params(kp, input_dim, output_dim, hidden)
    kparams, out_dim = prepare_params(params)
    state = jax.random.normal(kx, (batch, input_dim), jnp.float32)

    mu = jax.block_until_ready(actor_forward(state, kparams, max_action, out_dim))
    assert mu.shape == (batch, output_dim)
    assert jnp.allclose(mu, actor_forward_ref_bf16(state, params, max_action),
                        atol=2e-3, rtol=2e-3)
    assert jnp.allclose(mu, actor_forward_ref_f32(state, params, max_action),
                        atol=5e-2, rtol=5e-2)

    # Single grid step with a remainder sub-chunk (300 = 2*128 + 44).
    key, kx2 = jax.random.split(key)
    s300 = jax.random.normal(kx2, (300, input_dim), jnp.float32)
    mu300 = jax.block_until_ready(actor_forward(s300, kparams, max_action, out_dim))
    assert mu300.shape == (300, output_dim)
    assert jnp.allclose(mu300, actor_forward_ref_bf16(s300, params, max_action),
                        atol=2e-3, rtol=2e-3)

    # Multi-tile grid path with a ragged last batch tile (1300 rows, tb=512).
    key, kx3 = jax.random.split(key)
    s1300 = jax.random.normal(kx3, (1300, input_dim), jnp.float32)
    mu1300 = jax.block_until_ready(
        actor_forward(s1300, kparams, max_action, out_dim, tb=512))
    assert mu1300.shape == (1300, output_dim)
    assert jnp.allclose(mu1300, actor_forward_ref_bf16(s1300, params, max_action),
                        atol=2e-3, rtol=2e-3)

    print("KERNEL_OK")
</pallas_src>

<mosaic_0001>
module attributes {stable_mosaic.version = 11 : i64} {
  func.func @_actor_mlp_kernel(%arg0: i32, %arg1: memref<1x1xf32, #tpu.memory_space<smem>>, %arg2: memref<8x16xf32, #tpu.memory_space<vmem>>, %arg3: memref<16x128xbf16, #tpu.memory_space<vmem>>, %arg4: memref<1x128xf32, #tpu.memory_space<vmem>>, %arg5: memref<128x128xbf16, #tpu.memory_space<vmem>>, %arg6: memref<1x128xf32, #tpu.memory_space<vmem>>, %arg7: memref<128x128xbf16, #tpu.memory_space<vmem>>, %arg8: memref<1x128xf32, #tpu.memory_space<vmem>>, %arg9: memref<8x8xf32, #tpu.memory_space<vmem>>) attributes {dimension_semantics = [#tpu.dimension_semantics<arbitrary>], iteration_bounds = array<i64: 1>, scalar_prefetch = 0 : i64, scratch_operands = 0 : i64, tpu.core_type = #tpu.core_type<tc>, window_params = [{transform_indices = @transform_0, window_bounds = array<i64: 1, 1>}, {transform_indices = @transform_1, window_bounds = array<i64: 8, 16>}, {pipeline_mode = #tpu.pipeline_mode<synchronous>, transform_indices = @transform_2, window_bounds = array<i64: 16, 128>}, {pipeline_mode = #tpu.pipeline_mode<synchronous>, transform_indices = @transform_3, window_bounds = array<i64: 1, 128>}, {pipeline_mode = #tpu.pipeline_mode<synchronous>, transform_indices = @transform_4, window_bounds = array<i64: 128, 128>}, {pipeline_mode = #tpu.pipeline_mode<synchronous>, transform_indices = @transform_5, window_bounds = array<i64: 1, 128>}, {pipeline_mode = #tpu.pipeline_mode<synchronous>, transform_indices = @transform_6, window_bounds = array<i64: 128, 128>}, {pipeline_mode = #tpu.pipeline_mode<synchronous>, transform_indices = @transform_7, window_bounds = array<i64: 1, 128>}, {transform_indices = @transform_8, window_bounds = array<i64: 8, 8>}]} {
    %c0 = arith.constant 0 : index
    %c0_0 = arith.constant 0 : index
    %0 = memref.load %arg1[%c0, %c0_0] : memref<1x1xf32, #tpu.memory_space<smem>>
    %c0_1 = arith.constant 0 : index
    %c0_2 = arith.constant 0 : index
    %1 = vector.load %arg3[%c0_1, %c0_2] : memref<16x128xbf16, #tpu.memory_space<vmem>>, vector<16x128xbf16>
    %c0_3 = arith.constant 0 : index
    %c0_4 = arith.constant 0 : index
    %2 = vector.load %arg4[%c0_3, %c0_4] : memref<1x128xf32, #tpu.memory_space<vmem>>, vector<1x128xf32>
    %c0_5 = arith.constant 0 : index
    %c0_6 = arith.constant 0 : index
    %3 = vector.load %arg5[%c0_5, %c0_6] : memref<128x128xbf16, #tpu.memory_space<vmem>>, vector<128x128xbf16>
    %c0_7 = arith.constant 0 : index
    %c0_8 = arith.constant 0 : index
    %4 = vector.load %arg6[%c0_7, %c0_8] : memref<1x128xf32, #tpu.memory_space<vmem>>, vector<1x128xf32>
    %c0_9 = arith.constant 0 : index
    %c0_10 = arith.constant 0 : index
    %5 = vector.load %arg7[%c0_9, %c0_10] : memref<128x128xbf16, #tpu.memory_space<vmem>>, vector<128x128xbf16>
    %c0_11 = arith.constant 0 : index
    %c0_12 = arith.constant 0 : index
    %6 = vector.load %arg8[%c0_11, %c0_12] : memref<1x128xf32, #tpu.memory_space<vmem>>, vector<1x128xf32>
    %c0_13 = arith.constant 0 : index
    %c0_14 = arith.constant 0 : index
    %7 = vector.load %arg2[%c0_13, %c0_14] : memref<8x16xf32, #tpu.memory_space<vmem>>, vector<8x16xf32>
    %8 = arith.truncf %7 : vector<8x16xf32> to vector<8x16xbf16>
    %cst = arith.constant dense<0.000000e+00> : vector<8x128xf32>
    %9 = tpu.matmul %8, %1, %cst {dimension_numbers = #tpu.dot_dimension_numbers<[1], [0], [0], [1], [0, 0, 1, 1], [], []>} : vector<8x16xbf16>, vector<16x128xbf16>, vector<8x128xf32> -> vector<8x128xf32>
    %10 = vector.broadcast %2 : vector<1x128xf32> to vector<8x128xf32>
    %11 = arith.addf %9, %10 : vector<8x128xf32>
    %cst_15 = arith.constant 0.000000e+00 : f32
    %12 = vector.broadcast %cst_15 : f32 to vector<8x128xf32>
    %13 = arith.maximumf %11, %12 : vector<8x128xf32>
    %14 = arith.truncf %13 : vector<8x128xf32> to vector<8x128xbf16>
    %cst_16 = arith.constant dense<0.000000e+00> : vector<8x128xf32>
    %15 = tpu.matmul %14, %3, %cst_16 {dimension_numbers = #tpu.dot_dimension_numbers<[1], [0], [0], [1], [0, 0, 1, 1], [], []>} : vector<8x128xbf16>, vector<128x128xbf16>, vector<8x128xf32> -> vector<8x128xf32>
    %16 = vector.broadcast %4 : vector<1x128xf32> to vector<8x128xf32>
    %17 = arith.addf %15, %16 : vector<8x128xf32>
    %cst_17 = arith.constant 0.000000e+00 : f32
    %18 = vector.broadcast %cst_17 : f32 to vector<8x128xf32>
    %19 = arith.maximumf %17, %18 : vector<8x128xf32>
    %20 = arith.truncf %19 : vector<8x128xf32> to vector<8x128xbf16>
    %cst_18 = arith.constant dense<0.000000e+00> : vector<8x128xf32>
    %21 = tpu.matmul %20, %5, %cst_18 {dimension_numbers = #tpu.dot_dimension_numbers<[1], [0], [0], [1], [0, 0, 1, 1], [], []>} : vector<8x128xbf16>, vector<128x128xbf16>, vector<8x128xf32> -> vector<8x128xf32>
    %22 = vector.broadcast %6 : vector<1x128xf32> to vector<8x128xf32>
    %23 = arith.addf %21, %22 : vector<8x128xf32>
    %24 = math.tanh %23 : vector<8x128xf32>
    %25 = vector.broadcast %0 : f32 to vector<8x128xf32>
    %26 = arith.mulf %24, %25 : vector<8x128xf32>
    %27 = vector.extract_strided_slice %26 {offsets = [0, 0], sizes = [8, 8], strides = [1, 1]} : vector<8x128xf32> to vector<8x8xf32>
    %c0_19 = arith.constant 0 : index
    %c0_20 = arith.constant 0 : index
    %28 = vector.load %arg9[%c0_19, %c0_20] : memref<8x8xf32, #tpu.memory_space<vmem>>, vector<8x8xf32>
    tpu.vector_store %arg9[%c0_19, %c0_20], %27 {strides = array<i32>} : memref<8x8xf32, #tpu.memory_space<vmem>>, vector<8x8xf32>,
    return
  }
  func.func @transform_0(%arg0: i32) -> (i32, i32) {
    %c0_i32 = arith.constant 0 : i32
    %c0_i32_0 = arith.constant 0 : i32
    %c0_i32_1 = arith.constant 0 : i32
    return %c0_i32, %c0_i32_0 : i32, i32
  }
  func.func @transform_1(%arg0: i32) -> (i32, i32) {
    %c0_i32 = arith.constant 0 : i32
    %c0_i32_0 = arith.constant 0 : i32
    return %arg0, %c0_i32 : i32, i32
  }
  func.func @transform_2(%arg0: i32) -> (i32, i32) {
    %c0_i32 = arith.constant 0 : i32
    %c0_i32_0 = arith.constant 0 : i32
    %c0_i32_1 = arith.constant 0 : i32
    return %c0_i32, %c0_i32_0 : i32, i32
  }
  func.func @transform_3(%arg0: i32) -> (i32, i32) {
    %c0_i32 = arith.constant 0 : i32
    %c0_i32_0 = arith.constant 0 : i32
    %c0_i32_1 = arith.constant 0 : i32
    return %c0_i32, %c0_i32_0 : i32, i32
  }
  func.func @transform_4(%arg0: i32) -> (i32, i32) {
    %c0_i32 = arith.constant 0 : i32
    %c0_i32_0 = arith.constant 0 : i32
    %c0_i32_1 = arith.constant 0 : i32
    return %c0_i32, %c0_i32_0 : i32, i32
  }
  func.func @transform_5(%arg0: i32) -> (i32, i32) {
    %c0_i32 = arith.constant 0 : i32
    %c0_i32_0 = arith.constant 0 : i32
    %c0_i32_1 = arith.constant 0 : i32
    return %c0_i32, %c0_i32_0 : i32, i32
  }
  func.func @transform_6(%arg0: i32) -> (i32, i32) {
    %c0_i32 = arith.constant 0 : i32
    %c0_i32_0 = arith.constant 0 : i32
    %c0_i32_1 = arith.constant 0 : i32
    return %c0_i32, %c0_i32_0 : i32, i32
  }
  func.func @transform_7(%arg0: i32) -> (i32, i32) {
    %c0_i32 = arith.constant 0 : i32
    %c0_i32_0 = arith.constant 0 : i32
    %c0_i32_1 = arith.constant 0 : i32
    return %c0_i32, %c0_i32_0 : i32, i32
  }
  func.func @transform_8(%arg0: i32) -> (i32, i32) {
    %c0_i32 = arith.constant 0 : i32
    %c0_i32_0 = arith.constant 0 : i32
    return %arg0, %c0_i32 : i32, i32
  }
}

</mosaic_0001>

<bundles_post_ra>
// kernel: tpu_custom_call.1
= control target key start
LH: loop header
LB: loop body
LE: loop exit
PB: predicated region body
PF: predicated region fallthrough
CT: control target
= control target key end

     0   :  { %14 = vsyncpa [#allocation4], 0  ;;  %s728_s0 = inlined_call_operand.<no memory space> [shape: f32[1,1], index: 0, kind: input, shape index: {}]   ;;  %s729_s1 = inlined_call_operand.hbm [shape: f32[8,16], index: 1, kind: input, shape index: {}]   ;;  %s730_s2 = inlined_call_operand.hbm [shape: bf16[16,128], index: 2, kind: input, shape index: {}]   ;;  %s731_s3 = inlined_call_operand.vmem [shape: f32[1,128], index: 3, kind: input, shape index: {}]   ;;  %s732_s4 = inlined_call_operand.hbm [shape: bf16[128,128], index: 4, kind: input, shape index: {}]   ;;  %s733_s5 = inlined_call_operand.vmem [shape: f32[1,128], index: 5, kind: input, shape index: {}]   ;;  %s734_s6 = inlined_call_operand.hbm [shape: bf16[128,128], index: 6, kind: input, shape index: {}]   ;;  %s735_s7 = inlined_call_operand.vmem [shape: f32[1,128], index: 7, kind: input, shape index: {}]   ;;  %s736_s8 = inlined_call_operand.hbm [shape: f32[8,8], index: 8, kind: output, shape index: {}]  }
   0x1   :  { %15 = vsyncpa [#allocation7], 0 }
   0x2   :  { %16 = vsyncpa [#allocation10], 0 }
   0x3   :  { %17 = vsyncpa [#allocation5], 0  ;;  %s618_s27 = smov [#allocation6]  }
   0x4   :  { %s35_s28 = sshll.u32 %s618_s27, 4  ;;  %s36_s28 = int_to_ptr.vmem [resolvable:$true] %s35_s28 }
   0x5   :  { %s518_s29 = scalar_lea.vmem %s36_s28, 128  ;;  %p523_p1 = scmp.lt.s32.totalorder %s36_s28, %s36_s28 }
   0x6   :  { %p519_p0 = scmp.ne.s32.totalorder %s36_s28, %s518_s29  ;;  %p524_p2 = scmp.lt.s32.totalorder %s518_s29, %s518_s29 }
   0x8   :  { %p525_p3 = por %p524_p2, %p523_p1 }
   0xa   :  { %p526_p4 = pnand %p525_p3, %p519_p0 }
   0xc   :  { %529 = shalt.err (!%p526_p4)
}
   0xd   :  { %s619_s30 = smov 64   ;;  %s620_s9 = smov 4  }
   0xe   :  { %41 = dma.hbm_to_vmem [thread:$0]  %s730_s2, 128, %s36_s28, [#allocation7], %s619_s30, %s619_s30, %s620_s9  }
   0xf   :  { %s621_s12 = smov [#allocation3]   ;;  %s622_s14 = smov [#allocation8]  }
  0x10   :  { %s26_s13 = sshll.u32 %s621_s12, 4  ;;  %s49_s15 = sshll.u32 %s622_s14, 4  ;;  %s27_s13 = int_to_ptr.vmem [resolvable:$true] %s26_s13  ;;  %s50_s15 = int_to_ptr.vmem [resolvable:$true] %s49_s15 }
  0x11   :  { %s538_s16 = scalar_lea.vmem %s27_s13, 128  ;;  %p543_p6 = scmp.lt.s32.totalorder %s27_s13, %s27_s13 }
  0x12   :  { %p539_p5 = scmp.ne.s32.totalorder %s27_s13, %s538_s16  ;;  %p544_p7 = scmp.lt.s32.totalorder %s538_s16, %s538_s16 }
  0x14   :  { %p545_p8 = por %p544_p7, %p543_p6 }
  0x16   :  { %p546_p9 = pnand %p545_p8, %p539_p5 }
  0x18   :  { %549 = shalt.err (!%p546_p9)
}
  0x19   :  { %29 = dma.hbm_to_vmem [thread:$0]  %s729_s1, 128, %s27_s13, [#allocation4]  }
  0x1a   :  { %s558_s19 = scalar_lea.vmem %s50_s15, 1024  ;;  %p563_p11 = scmp.lt.s32.totalorder %s50_s15, %s50_s15 }
  0x1b   :  { %p559_p10 = scmp.ne.s32.totalorder %s50_s15, %s558_s19  ;;  %p564_p12 = scmp.lt.s32.totalorder %s558_s19, %s558_s19 }
  0x1d   :  { %p565_p13 = por %p564_p12, %p563_p11 }
  0x1f   :  { %p566_p0 = pnand %p565_p13, %p559_p10 }
  0x21   :  { %569 = shalt.err (!%p566_p0)
}
  0x22   :  { %55 = dma.hbm_to_vmem [thread:$0]  %s732_s4, 1024, %s50_s15, [#allocation7], %s619_s30, %s619_s30, %s620_s9  }
  0x23   :  { %s623_s21 = smov [#allocation9]  }
  0x24   :  { %s63_s22 = sshll.u32 %s623_s21, 4  ;;  %s64_s22 = int_to_ptr.vmem [resolvable:$true] %s63_s22 }
  0x25   :  { %s578_s23 = scalar_lea.vmem %s64_s22, 1024  ;;  %p583_p2 = scmp.lt.s32.totalorder %s64_s22, %s64_s22 }
  0x26   :  { %p579_p1 = scmp.ne.s32.totalorder %s64_s22, %s578_s23  ;;  %p584_p3 = scmp.lt.s32.totalorder %s578_s23, %s578_s23 }
  0x28   :  { %p585_p4 = por %p584_p3, %p583_p2 }
  0x2a   :  { %p586_p5 = pnand %p585_p4, %p579_p1 }
  0x2c   :  { %589 = shalt.err (!%p586_p5)
}
  0x2d   :  { %69 = dma.hbm_to_vmem [thread:$0]  %s734_s6, 1024, %s64_s22, [#allocation10], %s619_s30, %s619_s30, %s620_s9  }
  0x2e   :  { %610 = dma.done.wait [#allocation4], 128  }
  0x2f   :  { %611 = vsyncadd [#allocation4], 4294967168 }
  0x30   :  { %612 = dma.done.wait [#allocation7], 1152  }
  0x31   :  { %613 = vsyncadd [#allocation7], 4294966144 }
  0x32   :  { %614 = dma.done.wait [#allocation10], 1024  }
  0x33   :  { %615 = vsyncadd [#allocation10], 4294966272  ;;  %v624_v0 = vmov 0.0   ;;  %vm625_vm0 = vmmov 0   ;;  %v491_v1 = vld [vmem:[#allocation6] sm:$0xff]   ;;  %v123_v2 = vld [vmem:[#allocation3] sm:$0xff]  ;;  %v374_v42 = vstv %s728_s0 }
  0x34   :  { %436 = vmatprep.subr.bf16.mxu0 %v624_v0  ;;  %438 = vmatprep.mubr.msk.bf16.mxu0 %vm625_vm0, %v624_v0  ;;  %v124_v3 = vpack.c.bf16 %v123_v2, %v123_v2  ;;  %vm137_vm1 = vcmask 130048   ;;  %v492_v4 = vld [vmem:[#allocation8 + $0x38] sm:$0xff]   ;;  %v493_v5 = vld [vmem:[#allocation8 + $0x30] sm:$0xff]   ;;  %v494_v6 = vld [vmem:[#allocation8 + $0x28] sm:$0xff]   ;;  %s626_s29 = smov [#allocation11]   ;;  %vm376_vm2 = vcmask 64512  }
  0x35   :  { %442 = vmatprep.subr.bf16.mxu1 %v624_v0  ;;  %458 = vmatprep.mubr.msk.bf16.mxu1 %vm625_vm0, %v624_v0  ;;  %v495_v7 = vld [vmem:[#allocation8 + $0x20] sm:$0xff]   ;;  %v496_v8 = vld [vmem:[#allocation8 + $0x18] sm:$0xff]   ;;  %v497_v9 = vld [vmem:[#allocation8 + $0x10] sm:$0xff]   ;;  %s384_s30 = sshll.u32 %s626_s29, 4  ;;  %s385_s30 = int_to_ptr.vmem [resolvable:$true] %s384_s30 }
  0x36   :  { %437 = vmatpush3.bf16.msra.mxu0 %v491_v1  ;;  %443 = vmatpush3.bf16.msra.mxu1 %v492_v4  ;;  %v498_v10 = vld [vmem:[#allocation8 + $0x8] sm:$0xff]   ;;  %v499_v11 = vld [vmem:[#allocation8] sm:$0xff]   ;;  %v500_v12 = vld [vmem:[#allocation9 + $0x38] sm:$0xff]   ;;  %s590_s9 = scalar_lea.vmem %s385_s30, 128  ;;  %p595_p7 = scmp.lt.s32.totalorder %s385_s30, %s385_s30 }
  0x37   :  { %462 = vmatprep.subr.bf16.mxu0 %v624_v0  ;;  %444 = vmatprep.subr.bf16.mxu1 %v624_v0  ;;  %v501_v13 = vld [vmem:[#allocation9 + $0x30] sm:$0xff]   ;;  %v502_v14 = vld [vmem:[#allocation9 + $0x28] sm:$0xff]   ;;  %v503_v15 = vld [vmem:[#allocation9 + $0x20] sm:$0xff]   ;;  %p591_p6 = scmp.ne.s32.totalorder %s385_s30, %s590_s9  ;;  %p596_p8 = scmp.lt.s32.totalorder %s590_s9, %s590_s9 }
  0x38   :  { %v504_v16 = vld [vmem:[#allocation9 + $0x18] sm:$0xff]   ;;  %v505_v17 = vld [vmem:[#allocation9 + $0x10] sm:$0xff]   ;;  %v506_v26 = vld [vmem:[#allocation9 + $0x8] sm:$0xff]  }
  0x39   :  { %439 = vmatmul.mubr.msk.bf16.vlgmr.msra.gmra.mxu0 %vm137_vm1, %v124_v3  ;;  %v395_v18 = vld [vmem:[%s731_s3] ss:$0 sm:$0xff]  ;;  %v507_v27 = vld [vmem:[#allocation9] sm:$0xff]   ;;  %p597_p9 = por %p596_p8, %p595_p7 }
  0x3a   :  { %478 = vmatprep.mubr.msk.bf16.mxu0 %vm625_vm0, %v624_v0  ;;  %445 = vmatpush3.bf16.msra.mxu1 %v493_v5  ;;  %v398_v28 = vld [vmem:[%s733_s5] ss:$0 sm:$0xff] }
  0x3b   :  { %446 = vmatprep.subr.bf16.mxu1 %v624_v0  ;;  %463 = vmatpush3.bf16.msra.mxu0 %v500_v12  ;;  %v407_v36 = vld [vmem:[%s735_s7] ss:$0 sm:$0xff]  ;;  %p598_p10 = pnand %p597_p9, %p591_p6 }
  0x3c   :  { %464 = vmatprep.subr.bf16.mxu0 %v624_v0 }
  0x3e   :  { %447 = vmatpush3.bf16.msra.mxu1 %v494_v6 }
  0x3f   :  { %448 = vmatprep.subr.bf16.mxu1 %v624_v0  ;;  %465 = vmatpush3.bf16.msra.mxu0 %v501_v13 }
  0x40   :  { %466 = vmatprep.subr.bf16.mxu0 %v624_v0 }
  0x42   :  { %449 = vmatpush3.bf16.msra.mxu1 %v495_v7 }
  0x43   :  { %450 = vmatprep.subr.bf16.mxu1 %v624_v0  ;;  %467 = vmatpush3.bf16.msra.mxu0 %v502_v14 }
  0x44   :  { %468 = vmatprep.subr.bf16.mxu0 %v624_v0 }
  0x46   :  { %451 = vmatpush3.bf16.msra.mxu1 %v496_v8 }
  0x47   :  { %452 = vmatprep.subr.bf16.mxu1 %v624_v0  ;;  %469 = vmatpush3.bf16.msra.mxu0 %v503_v15 }
  0x48   :  { %470 = vmatprep.subr.bf16.mxu0 %v624_v0 }
  0x4a   :  { %453 = vmatpush3.bf16.msra.mxu1 %v497_v9 }
  0x4b   :  { %454 = vmatprep.subr.bf16.mxu1 %v624_v0  ;;  %471 = vmatpush3.bf16.msra.mxu0 %v504_v16 }
  0x4c   :  { %472 = vmatprep.subr.bf16.mxu0 %v624_v0 }
  0x4e   :  { %455 = vmatpush3.bf16.msra.mxu1 %v498_v10 }
  0x4f   :  { %456 = vmatprep.subr.bf16.mxu1 %v624_v0  ;;  %473 = vmatpush3.bf16.msra.mxu0 %v505_v17 }
  0x50   :  { %474 = vmatprep.subr.bf16.mxu0 %v624_v0 }
  0x52   :  { %457 = vmatpush3.bf16.msra.mxu1 %v499_v11 }
  0x53   :  { %475 = vmatpush3.bf16.msra.mxu0 %v506_v26 }
  0x54   :  { %476 = vmatprep.subr.bf16.mxu0 %v624_v0 }
  0x57   :  { %477 = vmatpush3.bf16.msra.mxu0 %v507_v27 }
  0xf9   :  { %v175_v19 = vpop.f32.mrf.mxu0 }
  0xfa   :  { %v176_v20 = vadd.f32 %v395_v18, %v175_v19 }
  0xfb   :  { %v440_v21 = vpop.f32.mrf.mxu0 }
  0xfc   :  { %v181_v22 = vmax.f32 %v176_v20, 0.0 }
  0xfd   :  { %v178_v23 = vpop.f32.mrf.mxu0 }
  0xfe   :  { %v182_v24 = vpack.c.bf16 %v181_v22, %v181_v22 }
  0xff   :  { %v441_v25 = vpop.f32.mrf.mxu0 }
 0x100   :  { %459 = vmatmul.mubr.bf16.vlgmr.msra.gmra.mxu1 %v182_v24 }
 0x1c0   :  { %v271_v29 = vpop.f32.mrf.mxu1 }
 0x1c1   :  { %v272_v30 = vadd.f32 %v398_v28, %v271_v29 }
 0x1c2   :  { %v460_v31 = vpop.f32.mrf.mxu1 }
 0x1c3   :  { %v277_v32 = vmax.f32 %v272_v30, 0.0 }
 0x1c4   :  { %v274_v33 = vpop.f32.mrf.mxu1 }
 0x1c5   :  { %v278_v34 = vpack.c.bf16 %v277_v32, %v277_v32 }
 0x1c6   :  { %v461_v35 = vpop.f32.mrf.mxu1 }
 0x1c7   :  { %479 = vmatmul.mubr.bf16.vlgmr.msra.gmra.mxu0 %v278_v34 }
 0x287   :  { %v367_v37 = vpop.f32.mrf.mxu0 }
 0x288   :  { %v368_v38 = vadd.f32 %v407_v36, %v367_v37 }
 0x289   :  { %v480_v39 = vpop.f32.mrf.mxu0 }
 0x28a   :  { %508 = vtanh.f32 %v368_v38 }
 0x28b   :  { %v370_v40 = vpop.f32.mrf.mxu0 }
 0x28d   :  { %v481_v41 = vpop.f32.mrf.mxu0 }
 0x297   :  { %v509_v43 = vpop.eup %508 }
 0x298   :  { %v375_v44 = vmul.f32 %v509_v43, %v374_v42 }
 0x29a   :  { %377 = vst.msk [vmem:[#allocation11] sm:$0xff] %vm376_vm2, %v375_v44 }
 0x29b   :  { %601 = shalt.err (!%p598_p10)
}
 0x29c   :  { %387 = dma.vmem_to_hbm [thread:$0]  %s385_s30, 128, %s736_s8, [#allocation5]  }
 0x29d   :  { %616 = dma.done.wait [#allocation5], 128  }
 0x29e   :  { %617 = vsyncadd [#allocation5], 4294967168 }
 0x29f   :  { %391 = vsyncpa [#allocation4], 1 }
 0x2a0   :  { %392 = vsyncpa [#allocation7], 1 }
 0x2a1   :  { %393 = vsyncpa [#allocation10], 1 }
 0x2a2   :  { %394 = vsyncpa [#allocation5], 1 }

</bundles_post_ra>
